<compile_context>
chip_gen: v7x
topology: tpu7x:2x2x1
jax: 0.10.0
libtpu: 0.0.40
codegen_flags: <defaults>
</compile_context>

<pallas_src>
import functools
import math

import jax
import jax.numpy as jnp
from jax.experimental import pallas as pl
from jax.experimental.pallas import tpu as pltpu


_LANE = 128       # last-dim (lane) tile
_SUBLANE = 8      # second-to-last (sublane) tile
_MAX_TILE_M = 256  # batch tile (rows) per grid step


def _round_up(x, m):
    return (x + m - 1) // m * m


def _nbytes(shape, dtype):
    return math.prod(shape) * jnp.dtype(dtype).itemsize


def _mlp_kernel(*refs):
    """refs = (x, W0, b0, W1, b1, ..., W_{L-1}, b_{L-1}, out).

    Per layer: h = relu(h @ W + b).  The matmul accumulates in f32 on the MXU
    (inputs cast to the weight dtype, e.g. bf16), bias-add + ReLU run as an
    f32 epilogue, and the cast to the output dtype happens only at the final
    store.
    """
    x_ref = refs[0]
    o_ref = refs[-1]
    num_layers = (len(refs) - 2) // 2
    h = x_ref[...]
    for i in range(num_layers):
        w_ref = refs[1 + 2 * i]
        b_ref = refs[2 + 2 * i]
        acc = jnp.dot(h.astype(w_ref.dtype), w_ref[...],
                      preferred_element_type=jnp.float32)
        acc = acc + b_ref[...].astype(jnp.float32)   # (1, n_pad) broadcast
        h = jnp.maximum(acc, 0.0)                    # ReLU in f32 every layer
    o_ref[...] = h.astype(o_ref.dtype)


def init_params(layers, key, dtype=jnp.float32):
    """nn.Linear-style init. W stored as (in, out) so y = x @ W + b."""
    params = []
    for i in range(len(layers) - 1):
        fan_in, fan_out = layers[i], layers[i + 1]
        key, kw, kb = jax.random.split(key, 3)
        bound = 1.0 / float(fan_in) ** 0.5
        w = jax.random.uniform(kw, (fan_in, fan_out), dtype, -bound, bound)
        b = jax.random.uniform(kb, (1, fan_out), dtype, -bound, bound)
        params.append((w, b))
    return params


def pad_params(params, weight_dtype=jnp.bfloat16):
    """Zero-pad weights/biases to lane-dense (multiple-of-128) shapes, once.

    Weights are stored in `weight_dtype` (bf16 default: half the HBM->VMEM
    weight traffic + fast bf16 MXU path; accumulation stays f32).  Biases stay
    f32 since they are added in the f32 epilogue.
    """
    padded = []
    for w, b in params:
        fi, fo = w.shape
        fi_p, fo_p = _round_up(fi, _LANE), _round_up(fo, _LANE)
        w_p = jnp.zeros((fi_p, fo_p), weight_dtype).at[:fi, :fo].set(
            w.astype(weight_dtype))
        b_p = jnp.zeros((1, fo_p), jnp.float32).at[:, :fo].set(
            b.astype(jnp.float32))
        padded.append((w_p, b_p))
    return padded


def _vmem_limit_bytes(required):
    """Size the scoped-VMEM limit from the actual footprint, capped by HW."""
    try:
        physical = int(pltpu.get_tpu_info().vmem_capacity_bytes)
    except Exception:
        physical = 64 << 20   # be conservative: v7x has 64 MiB per TensorCore
    cap = (physical * 7) // 8  # headroom for the compiler's own scratch
    if required > cap:
        # TODO(synk): weights no longer fit next to the activation tiles;
        # switch to a K/N-tiled per-layer grid that streams weights instead
        # of the all-resident design.
        return cap
    return max(required, 32 << 20)


@functools.partial(jax.jit, static_argnames=("logical_out",))
def neural_net_forward(x, padded_params, *, logical_out):
    """Forward pass of the whole MLP in a single fused, batch-tiled kernel."""
    batch, feat = x.shape
    in_p = padded_params[0][0].shape[0]
    out_p = padded_params[-1][0].shape[1]

    tile_m = min(_MAX_TILE_M, _round_up(batch, _SUBLANE))
    batch_p = _round_up(batch, tile_m)
    grid = (batch_p // tile_m,)

    # Pad activation (zeros) only if needed; padded columns stay 0 in-kernel.
    if (batch_p, in_p) != (batch, feat):
        x_p = jnp.pad(x, ((0, batch_p - batch), (0, in_p - feat)))
    else:
        x_p = x

    flat_inputs = [x_p]
    in_specs = [pl.BlockSpec((tile_m, in_p), lambda i: (i, 0))]
    for w_p, b_p in padded_params:
        flat_inputs.extend((w_p, b_p))
        # Constant block index -> weights/biases stay pinned in VMEM across
        # grid steps (DMA'd once, reused for every batch tile).
        in_specs.append(pl.BlockSpec(w_p.shape, lambda i: (0, 0)))
        in_specs.append(pl.BlockSpec(b_p.shape, lambda i: (0, 0)))
    out_specs = pl.BlockSpec((tile_m, out_p), lambda i: (i, 0))

    # VMEM budget: params (x2 pipeline buffers) + double-buffered activation
    # and output tiles + f32 intermediate activations + fixed headroom.
    param_bytes = sum(_nbytes(w.shape, w.dtype) + _nbytes(b.shape, b.dtype)
                      for w, b in padded_params)
    widest = max(max(w.shape[1] for w, _ in padded_params), in_p)
    inter_bytes = 2 * tile_m * widest * 4
    tile_bytes = 2 * (_nbytes((tile_m, in_p), x.dtype)
                      + _nbytes((tile_m, out_p), x.dtype))
    required = 2 * param_bytes + tile_bytes + inter_bytes + (4 << 20)

    flops = 2 * sum(batch_p * w.shape[0] * w.shape[1]
                    for w, _ in padded_params)
    bytes_accessed = (param_bytes
                      + _nbytes((batch_p, in_p), x.dtype)
                      + _nbytes((batch_p, out_p), x.dtype))

    out = pl.pallas_call(
        _mlp_kernel,
        out_shape=jax.ShapeDtypeStruct((batch_p, out_p), x.dtype),
        grid_spec=pltpu.PrefetchScalarGridSpec(
            num_scalar_prefetch=0,
            grid=grid,
            in_specs=in_specs,
            out_specs=out_specs,
        ),
        compiler_params=pltpu.CompilerParams(
            dimension_semantics=("parallel",),     # v7x: split batch over 2 TCs
            vmem_limit_bytes=_vmem_limit_bytes(required),
        ),
        cost_estimate=pl.CostEstimate(
            flops=flops, transcendentals=0, bytes_accessed=bytes_accessed),
    )(*flat_inputs)

    # Slice back to logical shapes only at the wrapper boundary.
    return out[:batch, :logical_out]


if __name__ == "__main__":
    # Small MLP: layers = [32, 64, 128, 16], batch = 4.
    layers = [32, 64, 128, 16]
    batch = 4

    key = jax.random.PRNGKey(0)
    key, kx = jax.random.split(key)
    x = jax.random.normal(kx, (batch, layers[0]), dtype=jnp.float32)
    params = init_params(layers, key)

    # Reference: plain-JAX f32 forward on unpadded params (ReLU every layer).
    ref = x
    for w, b in params:
        ref = jnp.maximum(ref @ w + b, 0.0)

    # Default fast path: bf16 weights, f32 accumulation + epilogue.
    y_bf16 = neural_net_forward(x, pad_params(params, jnp.bfloat16),
                                logical_out=layers[-1])
    # Bit-faithful path: f32 weights (matches the PyTorch reference tightly).
    y_f32 = neural_net_forward(x, pad_params(params, jnp.float32),
                               logical_out=layers[-1])
    jax.block_until_ready((y_bf16, y_f32))

    assert y_bf16.shape == (batch, layers[-1]), y_bf16.shape
    assert y_f32.shape == (batch, layers[-1]), y_f32.shape
    assert jnp.allclose(y_f32, ref, atol=1e-5, rtol=1e-5)
    assert jnp.allclose(y_bf16, ref, atol=3e-2, rtol=3e-2)

    print("KERNEL_OK")
</pallas_src>

<mosaic_0001>
module attributes {stable_mosaic.version = 11 : i64} {
  func.func @_mlp_kernel(%arg0: i32, %arg1: memref<8x128xf32, #tpu.memory_space<vmem>>, %arg2: memref<128x128xbf16, #tpu.memory_space<vmem>>, %arg3: memref<1x128xf32, #tpu.memory_space<vmem>>, %arg4: memref<128x128xbf16, #tpu.memory_space<vmem>>, %arg5: memref<1x128xf32, #tpu.memory_space<vmem>>, %arg6: memref<128x128xbf16, #tpu.memory_space<vmem>>, %arg7: memref<1x128xf32, #tpu.memory_space<vmem>>, %arg8: memref<8x128xf32, #tpu.memory_space<vmem>>) attributes {dimension_semantics = [#tpu.dimension_semantics<parallel>], iteration_bounds = array<i64: 1>, scalar_prefetch = 0 : i64, scratch_operands = 0 : i64, tpu.core_type = #tpu.core_type<tc>, window_params = [{transform_indices = @transform_0, window_bounds = array<i64: 8, 128>}, {pipeline_mode = #tpu.pipeline_mode<synchronous>, transform_indices = @transform_1, window_bounds = array<i64: 128, 128>}, {pipeline_mode = #tpu.pipeline_mode<synchronous>, transform_indices = @transform_2, window_bounds = array<i64: 1, 128>}, {pipeline_mode = #tpu.pipeline_mode<synchronous>, transform_indices = @transform_3, window_bounds = array<i64: 128, 128>}, {pipeline_mode = #tpu.pipeline_mode<synchronous>, transform_indices = @transform_4, window_bounds = array<i64: 1, 128>}, {pipeline_mode = #tpu.pipeline_mode<synchronous>, transform_indices = @transform_5, window_bounds = array<i64: 128, 128>}, {pipeline_mode = #tpu.pipeline_mode<synchronous>, transform_indices = @transform_6, window_bounds = array<i64: 1, 128>}, {transform_indices = @transform_7, window_bounds = array<i64: 8, 128>}]} {
    %c0 = arith.constant 0 : index
    %c0_0 = arith.constant 0 : index
    %0 = vector.load %arg1[%c0, %c0_0] : memref<8x128xf32, #tpu.memory_space<vmem>>, vector<8x128xf32>
    %1 = arith.truncf %0 : vector<8x128xf32> to vector<8x128xbf16>
    %c0_1 = arith.constant 0 : index
    %c0_2 = arith.constant 0 : index
    %2 = vector.load %arg2[%c0_1, %c0_2] : memref<128x128xbf16, #tpu.memory_space<vmem>>, vector<128x128xbf16>
    %cst = arith.constant dense<0.000000e+00> : vector<8x128xf32>
    %3 = tpu.matmul %1, %2, %cst {dimension_numbers = #tpu.dot_dimension_numbers<[1], [0], [0], [1], [0, 0, 1, 1], [], []>} : vector<8x128xbf16>, vector<128x128xbf16>, vector<8x128xf32> -> vector<8x128xf32>
    %c0_3 = arith.constant 0 : index
    %c0_4 = arith.constant 0 : index
    %4 = vector.load %arg3[%c0_3, %c0_4] : memref<1x128xf32, #tpu.memory_space<vmem>>, vector<1x128xf32>
    %5 = vector.broadcast %4 : vector<1x128xf32> to vector<8x128xf32>
    %6 = arith.addf %3, %5 : vector<8x128xf32>
    %cst_5 = arith.constant 0.000000e+00 : f32
    %7 = vector.broadcast %cst_5 : f32 to vector<8x128xf32>
    %8 = arith.maximumf %6, %7 : vector<8x128xf32>
    %9 = arith.truncf %8 : vector<8x128xf32> to vector<8x128xbf16>
    %c0_6 = arith.constant 0 : index
    %c0_7 = arith.constant 0 : index
    %10 = vector.load %arg4[%c0_6, %c0_7] : memref<128x128xbf16, #tpu.memory_space<vmem>>, vector<128x128xbf16>
    %cst_8 = arith.constant dense<0.000000e+00> : vector<8x128xf32>
    %11 = tpu.matmul %9, %10, %cst_8 {dimension_numbers = #tpu.dot_dimension_numbers<[1], [0], [0], [1], [0, 0, 1, 1], [], []>} : vector<8x128xbf16>, vector<128x128xbf16>, vector<8x128xf32> -> vector<8x128xf32>
    %c0_9 = arith.constant 0 : index
    %c0_10 = arith.constant 0 : index
    %12 = vector.load %arg5[%c0_9, %c0_10] : memref<1x128xf32, #tpu.memory_space<vmem>>, vector<1x128xf32>
    %13 = vector.broadcast %12 : vector<1x128xf32> to vector<8x128xf32>
    %14 = arith.addf %11, %13 : vector<8x128xf32>
    %cst_11 = arith.constant 0.000000e+00 : f32
    %15 = vector.broadcast %cst_11 : f32 to vector<8x128xf32>
    %16 = arith.maximumf %14, %15 : vector<8x128xf32>
    %17 = arith.truncf %16 : vector<8x128xf32> to vector<8x128xbf16>
    %c0_12 = arith.constant 0 : index
    %c0_13 = arith.constant 0 : index
    %18 = vector.load %arg6[%c0_12, %c0_13] : memref<128x128xbf16, #tpu.memory_space<vmem>>, vector<128x128xbf16>
    %cst_14 = arith.constant dense<0.000000e+00> : vector<8x128xf32>
    %19 = tpu.matmul %17, %18, %cst_14 {dimension_numbers = #tpu.dot_dimension_numbers<[1], [0], [0], [1], [0, 0, 1, 1], [], []>} : vector<8x128xbf16>, vector<128x128xbf16>, vector<8x128xf32> -> vector<8x128xf32>
    %c0_15 = arith.constant 0 : index
    %c0_16 = arith.constant 0 : index
    %20 = vector.load %arg7[%c0_15, %c0_16] : memref<1x128xf32, #tpu.memory_space<vmem>>, vector<1x128xf32>
    %21 = vector.broadcast %20 : vector<1x128xf32> to vector<8x128xf32>
    %22 = arith.addf %19, %21 : vector<8x128xf32>
    %cst_17 = arith.constant 0.000000e+00 : f32
    %23 = vector.broadcast %cst_17 : f32 to vector<8x128xf32>
    %24 = arith.maximumf %22, %23 : vector<8x128xf32>
    %c0_18 = arith.constant 0 : index
    %c0_19 = arith.constant 0 : index
    %25 = vector.load %arg8[%c0_18, %c0_19] : memref<8x128xf32, #tpu.memory_space<vmem>>, vector<8x128xf32>
    tpu.vector_store %arg8[%c0_18, %c0_19], %24 {strides = array<i32>} : memref<8x128xf32, #tpu.memory_space<vmem>>, vector<8x128xf32>,
    return
  }
  func.func @transform_0(%arg0: i32) -> (i32, i32) {
    %c0_i32 = arith.constant 0 : i32
    %c0_i32_0 = arith.constant 0 : i32
    return %arg0, %c0_i32 : i32, i32
  }
  func.func @transform_1(%arg0: i32) -> (i32, i32) {
    %c0_i32 = arith.constant 0 : i32
    %c0_i32_0 = arith.constant 0 : i32
    %c0_i32_1 = arith.constant 0 : i32
    return %c0_i32, %c0_i32_0 : i32, i32
  }
  func.func @transform_2(%arg0: i32) -> (i32, i32) {
    %c0_i32 = arith.constant 0 : i32
    %c0_i32_0 = arith.constant 0 : i32
    %c0_i32_1 = arith.constant 0 : i32
    return %c0_i32, %c0_i32_0 : i32, i32
  }
  func.func @transform_3(%arg0: i32) -> (i32, i32) {
    %c0_i32 = arith.constant 0 : i32
    %c0_i32_0 = arith.constant 0 : i32
    %c0_i32_1 = arith.constant 0 : i32
    return %c0_i32, %c0_i32_0 : i32, i32
  }
  func.func @transform_4(%arg0: i32) -> (i32, i32) {
    %c0_i32 = arith.constant 0 : i32
    %c0_i32_0 = arith.constant 0 : i32
    %c0_i32_1 = arith.constant 0 : i32
    return %c0_i32, %c0_i32_0 : i32, i32
  }
  func.func @transform_5(%arg0: i32) -> (i32, i32) {
    %c0_i32 = arith.constant 0 : i32
    %c0_i32_0 = arith.constant 0 : i32
    %c0_i32_1 = arith.constant 0 : i32
    return %c0_i32, %c0_i32_0 : i32, i32
  }
  func.func @transform_6(%arg0: i32) -> (i32, i32) {
    %c0_i32 = arith.constant 0 : i32
    %c0_i32_0 = arith.constant 0 : i32
    %c0_i32_1 = arith.constant 0 : i32
    return %c0_i32, %c0_i32_0 : i32, i32
  }
  func.func @transform_7(%arg0: i32) -> (i32, i32) {
    %c0_i32 = arith.constant 0 : i32
    %c0_i32_0 = arith.constant 0 : i32
    return %arg0, %c0_i32 : i32, i32
  }
}

</mosaic_0001>

<bundles_post_ra>
// kernel: neural_net_forward.1
= control target key start
LH: loop header
LB: loop body
LE: loop exit
PB: predicated region body
PF: predicated region fallthrough
CT: control target
= control target key end

     0   :  { %12 = vsyncpa [#allocation3], 0  ;;  %s774_s0 = inlined_call_operand.vmem [shape: f32[8,128], index: 0, kind: input, shape index: {}]   ;;  %s775_s1 = inlined_call_operand.hbm [shape: bf16[128,128], index: 1, kind: input, shape index: {}]   ;;  %s776_s2 = inlined_call_operand.vmem [shape: f32[1,128], index: 2, kind: input, shape index: {}]   ;;  %s777_s3 = inlined_call_operand.hbm [shape: bf16[128,128], index: 3, kind: input, shape index: {}]   ;;  %s778_s4 = inlined_call_operand.vmem [shape: f32[1,128], index: 4, kind: input, shape index: {}]   ;;  %s779_s5 = inlined_call_operand.hbm [shape: bf16[128,128], index: 5, kind: input, shape index: {}]   ;;  %s780_s6 = inlined_call_operand.vmem [shape: f32[1,128], index: 6, kind: input, shape index: {}]   ;;  %s781_s7 = inlined_call_operand.vmem [shape: f32[8,128], index: 7, kind: output, shape index: {}]  }
   0x1   :  { %13 = vsyncpa [#allocation5], 0  ;;  %s630_s24 = smov [#allocation4]   ;;  %s631_s26 = smov [#allocation2]  }
   0x2   :  { %s35_s25 = sshll.u32 %s630_s24, 4  ;;  %s21_s27 = sshll.u32 %s631_s26, 4  ;;  %s36_s25 = int_to_ptr.vmem [resolvable:$true] %s35_s25  ;;  %s677_s27 = int_to_ptr.vmem [resolvable:$true] %s21_s27 }
   0x3   :  { %s560_s30 = scalar_lea.hbm %s777_s3, 1024 }
   0x4   :  { %p561_p0 = scmp.ne.s32.totalorder %s777_s3, %s560_s30  ;;  %p564_p1 = scmp.lt.u32.totalorder %s560_s30, %s777_s3 }
   0x6   :  { %p566_p2 = pnand %p564_p1, %p561_p0 }
   0x8   :  { %569 = shalt.err (!%p566_p2)
}
   0x9   :  { %s570_s12 = scalar_lea.vmem %s36_s25, 1024  ;;  %p575_p4 = scmp.lt.s32.totalorder %s36_s25, %s36_s25 }
   0xa   :  { %p571_p3 = scmp.ne.s32.totalorder %s36_s25, %s570_s12  ;;  %p576_p5 = scmp.lt.s32.totalorder %s570_s12, %s570_s12 }
   0xc   :  { %p577_p6 = por %p576_p5, %p575_p4 }
   0xe   :  { %p578_p7 = pnand %p577_p6, %p571_p3 }
  0x10   :  { %581 = shalt.err (!%p578_p7)
}
  0x11   :  { %s632_s13 = smov 64   ;;  %s633_s14 = smov 4  }
  0x12   :  { %41 = dma.hbm_to_vmem [thread:$0]  %s777_s3, 1024, %s36_s25, [#allocation5], %s632_s13, %s632_s13, %s633_s14  }
  0x13   :  { %s582_s19 = scalar_lea.hbm %s775_s1, 1024 }
  0x14   :  { %p583_p8 = scmp.ne.s32.totalorder %s775_s1, %s582_s19  ;;  %p586_p9 = scmp.lt.u32.totalorder %s582_s19, %s775_s1 }
  0x16   :  { %p588_p10 = pnand %p586_p9, %p583_p8 }
  0x18   :  { %591 = shalt.err (!%p588_p10)
}
  0x19   :  { %s592_s24 = scalar_lea.vmem %s677_s27, 1024  ;;  %p597_p12 = scmp.lt.s32.totalorder %s677_s27, %s677_s27 }
  0x1a   :  { %p593_p11 = scmp.ne.s32.totalorder %s677_s27, %s592_s24  ;;  %p598_p13 = scmp.lt.s32.totalorder %s592_s24, %s592_s24 }
  0x1c   :  { %p599_p0 = por %p598_p13, %p597_p12 }
  0x1e   :  { %p600_p1 = pnand %p599_p0, %p593_p11 }
  0x20   :  { %603 = shalt.err (!%p600_p1)
}
  0x21   :  { %27 = dma.hbm_to_vmem [thread:$0]  %s775_s1, 1024, %s677_s27, [#allocation3], %s632_s13, %s632_s13, %s633_s14  }
  0x22   :  { %s634_s26 = smov [#allocation6]   ;;  %s604_s8 = scalar_lea.hbm %s779_s5, 1024 }
  0x23   :  { %s49_s28 = sshll.u32 %s634_s26, 4  ;;  %p605_p2 = scmp.ne.s32.totalorder %s779_s5, %s604_s8  ;;  %s50_s28 = int_to_ptr.vmem [resolvable:$true] %s49_s28 }
  0x24   :  { %p608_p3 = scmp.lt.u32.totalorder %s604_s8, %s779_s5 }
  0x26   :  { %p610_p4 = pnand %p608_p3, %p605_p2 }
  0x28   :  { %613 = shalt.err (!%p610_p4)
}
  0x29   :  { %s614_s15 = scalar_lea.vmem %s50_s28, 1024  ;;  %p619_p6 = scmp.lt.s32.totalorder %s50_s28, %s50_s28 }
  0x2a   :  { %p615_p5 = scmp.ne.s32.totalorder %s50_s28, %s614_s15  ;;  %p620_p7 = scmp.lt.s32.totalorder %s614_s15, %s614_s15 }
  0x2c   :  { %p621_p8 = por %p620_p7, %p619_p6 }
  0x2e   :  { %p622_p9 = pnand %p621_p8, %p615_p5 }
  0x30   :  { %625 = shalt.err (!%p622_p9)
}
  0x31   :  { %55 = dma.hbm_to_vmem [thread:$0]  %s779_s5, 1024, %s50_s28, [#allocation5], %s632_s13, %s632_s13, %s633_s14  }
  0x32   :  { %626 = dma.done.wait [#allocation3], 1024  }
  0x33   :  { %627 = vsyncadd [#allocation3], 4294966272 }
  0x34   :  { %628 = dma.done.wait [#allocation5], 2048  }
  0x35   :  { %629 = vsyncadd [#allocation5], 4294965248  ;;  %v635_v0 = vmov 0.0   ;;  %vm636_vm0 = vmmov 0   ;;  %v536_v1 = vld [vmem:[#allocation2] sm:$0xff]   ;;  %v537_v2 = vld [vmem:[#allocation2 + $0x8] sm:$0xff]  }
  0x36   :  { %469 = vmatprep.subr.bf16.mxu0 %v635_v0  ;;  %485 = vmatprep.mubr.msk.bf16.mxu0 %vm636_vm0, %v635_v0  ;;  %v538_v3 = vld [vmem:[#allocation2 + $0x10] sm:$0xff]   ;;  %v544_v4 = vld [vmem:[#allocation4] sm:$0xff]   ;;  %v539_v5 = vld [vmem:[#allocation2 + $0x18] sm:$0xff]  }
  0x37   :  { %489 = vmatprep.subr.bf16.mxu1 %v635_v0  ;;  %505 = vmatprep.mubr.msk.bf16.mxu1 %vm636_vm0, %v635_v0  ;;  %v545_v6 = vld [vmem:[#allocation4 + $0x8] sm:$0xff]   ;;  %v540_v7 = vld [vmem:[#allocation2 + $0x20] sm:$0xff]   ;;  %v546_v8 = vld [vmem:[#allocation4 + $0x10] sm:$0xff]  }
  0x38   :  { %470 = vmatpush3.bf16.msra.mxu0 %v536_v1  ;;  %490 = vmatpush3.bf16.msra.mxu1 %v544_v4  ;;  %v541_v9 = vld [vmem:[#allocation2 + $0x28] sm:$0xff]   ;;  %v547_v10 = vld [vmem:[#allocation4 + $0x18] sm:$0xff]   ;;  %v542_v11 = vld [vmem:[#allocation2 + $0x30] sm:$0xff]  }
  0x39   :  { %471 = vmatprep.subr.bf16.mxu0 %v635_v0  ;;  %491 = vmatprep.subr.bf16.mxu1 %v635_v0  ;;  %v548_v12 = vld [vmem:[#allocation4 + $0x20] sm:$0xff]   ;;  %v543_v13 = vld [vmem:[#allocation2 + $0x38] sm:$0xff]   ;;  %v549_v15 = vld [vmem:[#allocation4 + $0x28] sm:$0xff]  }
  0x3a   :  { %v68_v14 = vld [vmem:[%s774_s0] sm:$0xff]  ;;  %v550_v17 = vld [vmem:[#allocation4 + $0x30] sm:$0xff]   ;;  %v551_v18 = vld [vmem:[#allocation4 + $0x38] sm:$0xff]  }
  0x3b   :  { %v69_v16 = vpack.c.bf16 %v68_v14, %v68_v14  ;;  %v552_v19 = vld [vmem:[#allocation6] sm:$0xff]   ;;  %v553_v20 = vld [vmem:[#allocation6 + $0x8] sm:$0xff]   ;;  %v554_v21 = vld [vmem:[#allocation6 + $0x10] sm:$0xff]  }
  0x3c   :  { %472 = vmatpush3.bf16.msra.mxu0 %v537_v2  ;;  %492 = vmatpush3.bf16.msra.mxu1 %v545_v6  ;;  %v555_v22 = vld [vmem:[#allocation6 + $0x18] sm:$0xff]   ;;  %v556_v23 = vld [vmem:[#allocation6 + $0x20] sm:$0xff]   ;;  %v557_v24 = vld [vmem:[#allocation6 + $0x28] sm:$0xff]  }
  0x3d   :  { %473 = vmatprep.subr.bf16.mxu0 %v635_v0  ;;  %493 = vmatprep.subr.bf16.mxu1 %v635_v0  ;;  %v415_v25 = vld [vmem:[%s776_s2] ss:$0 sm:$0xff]  ;;  %v558_v33 = vld [vmem:[#allocation6 + $0x30] sm:$0xff]   ;;  %v559_v34 = vld [vmem:[#allocation6 + $0x38] sm:$0xff]  }
  0x3e   :  { %v424_v35 = vld [vmem:[%s778_s4] ss:$0 sm:$0xff] }
  0x3f   :  { %v433_v43 = vld [vmem:[%s780_s6] ss:$0 sm:$0xff] }
  0x40   :  { %474 = vmatpush3.bf16.msra.mxu0 %v538_v3  ;;  %494 = vmatpush3.bf16.msra.mxu1 %v546_v8 }
  0x41   :  { %475 = vmatprep.subr.bf16.mxu0 %v635_v0  ;;  %495 = vmatprep.subr.bf16.mxu1 %v635_v0 }
  0x44   :  { %476 = vmatpush3.bf16.msra.mxu0 %v539_v5  ;;  %496 = vmatpush3.bf16.msra.mxu1 %v547_v10 }
  0x45   :  { %477 = vmatprep.subr.bf16.mxu0 %v635_v0  ;;  %497 = vmatprep.subr.bf16.mxu1 %v635_v0 }
  0x48   :  { %478 = vmatpush3.bf16.msra.mxu0 %v540_v7  ;;  %498 = vmatpush3.bf16.msra.mxu1 %v548_v12 }
  0x49   :  { %479 = vmatprep.subr.bf16.mxu0 %v635_v0  ;;  %499 = vmatprep.subr.bf16.mxu1 %v635_v0 }
  0x4c   :  { %480 = vmatpush3.bf16.msra.mxu0 %v541_v9  ;;  %500 = vmatpush3.bf16.msra.mxu1 %v549_v15 }
  0x4d   :  { %481 = vmatprep.subr.bf16.mxu0 %v635_v0  ;;  %501 = vmatprep.subr.bf16.mxu1 %v635_v0 }
  0x50   :  { %482 = vmatpush3.bf16.msra.mxu0 %v542_v11  ;;  %502 = vmatpush3.bf16.msra.mxu1 %v550_v17 }
  0x51   :  { %483 = vmatprep.subr.bf16.mxu0 %v635_v0  ;;  %503 = vmatprep.subr.bf16.mxu1 %v635_v0 }
  0x54   :  { %484 = vmatpush3.bf16.msra.mxu0 %v543_v13  ;;  %504 = vmatpush3.bf16.msra.mxu1 %v551_v18 }
  0x55   :  { %509 = vmatprep.subr.bf16.mxu0 %v635_v0 }
  0x57   :  { %486 = vmatmul.mubr.bf16.vlgmr.msra.gmra.mrb[0].mxu0 %v69_v16 }
  0x58   :  { %525 = vmatprep.mubr.msk.bf16.mxu0 %vm636_vm0, %v635_v0  ;;  %510 = vmatpush3.bf16.msra.mxu0 %v552_v19 }
  0x59   :  { %511 = vmatprep.subr.bf16.mxu0 %v635_v0 }
  0x5c   :  { %512 = vmatpush3.bf16.msra.mxu0 %v553_v20 }
  0x5d   :  { %513 = vmatprep.subr.bf16.mxu0 %v635_v0 }
  0x60   :  { %514 = vmatpush3.bf16.msra.mxu0 %v554_v21 }
  0x61   :  { %515 = vmatprep.subr.bf16.mxu0 %v635_v0 }
  0x64   :  { %516 = vmatpush3.bf16.msra.mxu0 %v555_v22 }
  0x65   :  { %517 = vmatprep.subr.bf16.mxu0 %v635_v0 }
  0x68   :  { %518 = vmatpush3.bf16.msra.mxu0 %v556_v23 }
  0x69   :  { %519 = vmatprep.subr.bf16.mxu0 %v635_v0 }
  0x6c   :  { %520 = vmatpush3.bf16.msra.mxu0 %v557_v24 }
  0x6d   :  { %521 = vmatprep.subr.bf16.mxu0 %v635_v0 }
  0x70   :  { %522 = vmatpush3.bf16.msra.mxu0 %v558_v33 }
  0x71   :  { %523 = vmatprep.subr.bf16.mxu0 %v635_v0 }
  0x74   :  { %524 = vmatpush3.bf16.msra.mxu0 %v559_v34 }
 0x12a   :  { %v175_v26 = vpop.f32.mrb[0].mxu0 }
 0x12b   :  { %v176_v27 = vadd.f32 %v415_v25, %v175_v26  ;;  %v487_v28 = vpop.f32.mrb[1].mxu0 }
 0x12c   :  { %v178_v29 = vpop.f32.mrb[2].mxu0 }
 0x12d   :  { %v181_v30 = vmax.f32 %v176_v27, 0.0  ;;  %v488_v31 = vpop.f32.mrb[3].mxu0 }
 0x12f   :  { %v182_v32 = vpack.c.bf16 %v181_v30, %v181_v30 }
 0x131   :  { %506 = vmatmul.mubr.bf16.vlgmr.msra.gmra.mrb[0].mxu1 %v182_v32 }
 0x204   :  { %v288_v36 = vpop.f32.mrb[0].mxu1 }
 0x205   :  { %v289_v37 = vadd.f32 %v424_v35, %v288_v36  ;;  %v507_v38 = vpop.f32.mrb[1].mxu1 }
 0x206   :  { %v291_v39 = vpop.f32.mrb[2].mxu1 }
 0x207   :  { %v294_v40 = vmax.f32 %v289_v37, 0.0  ;;  %v508_v41 = vpop.f32.mrb[3].mxu1 }
 0x209   :  { %v295_v42 = vpack.c.bf16 %v294_v40, %v294_v40 }
 0x20b   :  { %526 = vmatmul.mubr.bf16.vlgmr.msra.gmra.mrb[4].mxu0 %v295_v42 }
 0x2de   :  { %v401_v44 = vpop.f32.mrb[4].mxu0 }
 0x2df   :  { %v402_v45 = vadd.f32 %v433_v43, %v401_v44  ;;  %v527_v46 = vpop.f32.mrb[5].mxu0 }
 0x2e0   :  { %v404_v47 = vpop.f32.mrb[6].mxu0 }
 0x2e1   :  { %v407_v48 = vmax.f32 %v402_v45, 0.0  ;;  %v528_v49 = vpop.f32.mrb[7].mxu0 }
 0x2e3   :  { %408 = vst [vmem:[%s781_s7] sm:$0xff] %v407_v48 }
 0x2e4   :  { %413 = vsyncpa [#allocation3], 1 }
 0x2e5   :  { %414 = vsyncpa [#allocation5], 1 }

</bundles_post_ra>
